<compile_context>
chip_gen: v7x
topology: tpu7x:2x2x1
jax: 0.10.0
libtpu: 0.0.40
codegen_flags: <defaults>
</compile_context>

<pallas_src>
import jax
import jax.numpy as jnp
from jax.experimental import pallas as pl
from jax.experimental.pallas import tpu as pltpu

IN = 1
HIDDEN = 2048
OUT = 24


def mlp_kernel(x_ref, w1_ref, b1_ref, w2_ref, b2_ref, o_ref):
    # fc1: degenerate K=1 contraction -> VPU broadcast multiply-add (no MXU).
    # Runs in bf16 on v6e/v7x (bf16 VPU/EUP), f32 on v5e -- dtype is chosen
    # by the wrapper via the dtype of x/w1/b1.
    h = x_ref[...] * w1_ref[...] + b1_ref[...]
    h = jnp.tanh(h)
    # fc2 on the MXU: bf16 operands, f32 accumulation.  astype is a no-op on
    # the bf16 path.
    # TODO(synk): on v5e, if the bundle dump shows a single-MXU serial weight
    # push for this K=2048 / M=16 matmul, split K into 4 partial dots
    # accumulated in f32 to spread pushes across the 4 MXUs.
    y = jnp.dot(h.astype(jnp.bfloat16), w2_ref[...],
                preferred_element_type=jnp.float32)
    o_ref[...] = (y + b2_ref[...]).astype(o_ref.dtype)


def _bf16_elementwise_ok():
    """bf16 VPU/EUP exists on v6e and newer; v5e and older lack it."""
    try:
        kind = jax.devices()[0].device_kind.lower()
    except Exception:
        return False
    return ("v6" in kind) or ("v7" in kind)


def net_forward(x, w1, b1, w2, b2):
    """x: (B, 1) f32 -> (B, OUT) f32."""
    B = x.shape[0]
    # Match the fc1 elementwise dtype chosen in prepare_params.
    x = x.astype(w1.dtype)
    # bf16 MXU LHS packs 16 rows per sublane tile -> pad batch to multiple
    # of 16 so the cast / vmatmul feed sees a fully-populated packed tile.
    B_pad = ((B + 15) // 16) * 16
    if B_pad != B:
        x = jnp.pad(x, ((0, B_pad - B), (0, 0)))

    out = pl.pallas_call(
        mlp_kernel,
        out_shape=jax.ShapeDtypeStruct((B_pad, OUT), jnp.float32),
        in_specs=[
            pl.BlockSpec(memory_space=pltpu.MemorySpace.VMEM),  # x  (B_pad, 1)
            pl.BlockSpec(memory_space=pltpu.MemorySpace.VMEM),  # w1 (1, 2048)
            pl.BlockSpec(memory_space=pltpu.MemorySpace.VMEM),  # b1 (1, 2048)
            pl.BlockSpec(memory_space=pltpu.MemorySpace.VMEM),  # w2 (2048, 24) bf16
            pl.BlockSpec(memory_space=pltpu.MemorySpace.VMEM),  # b2 (1, 24) f32
        ],
        out_specs=pl.BlockSpec(memory_space=pltpu.MemorySpace.VMEM),
        compiler_params=pltpu.CompilerParams(vmem_limit_bytes=4 * 1024 * 1024),
    )(x, w1, b1, w2, b2)

    # TODO(synk): if this forward runs repeatedly with fixed weights, keep
    # w1/b1/w2/b2 VMEM-resident across calls (cross-pallas_call prefetch
    # future, or fold many steps into one call with constant weight
    # index_maps) instead of re-DMA-ing ~130 KiB of weights per call.
    # TODO(synk): if B grows past a few hundred, add a 1-D "parallel" batch
    # grid (tile 512-1024 rows, weight index_maps constant in the batch axis)
    # so v7x's second TensorCore is used; at B=8 grid-step overhead dominates.
    return out[:B, :OUT]


def init_params(key):
    """Param init mimicking nn.Linear's U(-1/sqrt(fan_in), +) shapes."""
    k1, k2, k3, k4 = jax.random.split(key, 4)
    # fc1: Linear(1, 2048) -> W1 (1, 2048), b1 (1, 2048); fan_in = 1
    lim1 = 1.0
    w1 = jax.random.uniform(k1, (IN, HIDDEN), jnp.float32, -lim1, lim1)
    b1 = jax.random.uniform(k2, (1, HIDDEN), jnp.float32, -lim1, lim1)
    # fc2: Linear(2048, 24) -> W2 (2048, 24), b2 (1, 24); fan_in = 2048
    lim2 = 1.0 / float(jnp.sqrt(jnp.float32(HIDDEN)))
    w2 = jax.random.uniform(k3, (HIDDEN, OUT), jnp.float32, -lim2, lim2)
    b2 = jax.random.uniform(k4, (1, OUT), jnp.float32, -lim2, lim2)
    return w1, b1, w2, b2


def prepare_params(w1, b1, w2, b2):
    """One-time layout plumbing: W2 -> bf16 (unpadded); fc1 params in the
    elementwise dtype the target chip can run natively (bf16 on v6e/v7x,
    f32 on v5e and older)."""
    ew_dtype = jnp.bfloat16 if _bf16_elementwise_ok() else jnp.float32
    return (w1.astype(ew_dtype), b1.astype(ew_dtype),
            w2.astype(jnp.bfloat16), b2.astype(jnp.float32))


if __name__ == "__main__":
    key = jax.random.PRNGKey(0)
    kx, kp = jax.random.split(key)

    B = 8
    x = jax.random.normal(kx, (B, IN), jnp.float32)
    w1, b1, w2, b2 = init_params(kp)
    w1_k, b1_k, w2_k, b2_k = prepare_params(w1, b1, w2, b2)

    out = net_forward(x, w1_k, b1_k, w2_k, b2_k)
    out = jax.block_until_ready(out)

    # Pure-JAX f32 reference (original module semantics).  bf16 fc2 weights
    # (and bf16 fc1/tanh on v6e/v7x) introduce ~5e-3-level drift over the
    # K=2048 contraction; 2e-2 tolerance covers it while still catching real
    # regressions (tightened from the previous 5e-2).
    ref = jnp.tanh(x @ w1 + b1) @ w2 + b2
    assert out.shape == (B, OUT)
    assert jnp.allclose(out, ref, atol=2e-2, rtol=2e-2), "mismatch vs reference"

    print("KERNEL_OK")
</pallas_src>

<mosaic_0001>
module attributes {stable_mosaic.version = 11 : i64} {
  func.func @mlp_kernel(%arg0: memref<16x1xf32, #tpu.memory_space<vmem>>, %arg1: memref<1x2048xf32, #tpu.memory_space<vmem>>, %arg2: memref<1x2048xf32, #tpu.memory_space<vmem>>, %arg3: memref<2048x24xbf16, #tpu.memory_space<vmem>>, %arg4: memref<1x24xf32, #tpu.memory_space<vmem>>, %arg5: memref<16x24xf32, #tpu.memory_space<vmem>>) attributes {dimension_semantics = [], scalar_prefetch = 0 : i64, scratch_operands = 0 : i64, tpu.core_type = #tpu.core_type<tc>} {
    %c0 = arith.constant 0 : index
    %c0_0 = arith.constant 0 : index
    %0 = vector.load %arg0[%c0, %c0_0] : memref<16x1xf32, #tpu.memory_space<vmem>>, vector<16x1xf32>
    %c0_1 = arith.constant 0 : index
    %c0_2 = arith.constant 0 : index
    %1 = vector.load %arg1[%c0_1, %c0_2] : memref<1x2048xf32, #tpu.memory_space<vmem>>, vector<1x2048xf32>
    %2 = vector.broadcast %0 : vector<16x1xf32> to vector<16x2048xf32>
    %3 = vector.broadcast %1 : vector<1x2048xf32> to vector<16x2048xf32>
    %4 = arith.mulf %2, %3 : vector<16x2048xf32>
    %c0_3 = arith.constant 0 : index
    %c0_4 = arith.constant 0 : index
    %5 = vector.load %arg2[%c0_3, %c0_4] : memref<1x2048xf32, #tpu.memory_space<vmem>>, vector<1x2048xf32>
    %6 = vector.broadcast %5 : vector<1x2048xf32> to vector<16x2048xf32>
    %7 = arith.addf %4, %6 : vector<16x2048xf32>
    %8 = math.tanh %7 : vector<16x2048xf32>
    %9 = arith.truncf %8 : vector<16x2048xf32> to vector<16x2048xbf16>
    %c0_5 = arith.constant 0 : index
    %c0_6 = arith.constant 0 : index
    %10 = vector.load %arg3[%c0_5, %c0_6] : memref<2048x24xbf16, #tpu.memory_space<vmem>>, vector<2048x24xbf16>
    %cst = arith.constant dense<0.000000e+00> : vector<16x24xf32>
    %11 = tpu.matmul %9, %10, %cst {dimension_numbers = #tpu.dot_dimension_numbers<[1], [0], [0], [1], [0, 0, 1, 1], [], []>} : vector<16x2048xbf16>, vector<2048x24xbf16>, vector<16x24xf32> -> vector<16x24xf32>
    %c0_7 = arith.constant 0 : index
    %c0_8 = arith.constant 0 : index
    %12 = vector.load %arg4[%c0_7, %c0_8] : memref<1x24xf32, #tpu.memory_space<vmem>>, vector<1x24xf32>
    %13 = vector.broadcast %12 : vector<1x24xf32> to vector<16x24xf32>
    %14 = arith.addf %11, %13 : vector<16x24xf32>
    %c0_9 = arith.constant 0 : index
    %c0_10 = arith.constant 0 : index
    %15 = vector.load %arg5[%c0_9, %c0_10] : memref<16x24xf32, #tpu.memory_space<vmem>>, vector<16x24xf32>
    tpu.vector_store %arg5[%c0_9, %c0_10], %14 {strides = array<i32>} : memref<16x24xf32, #tpu.memory_space<vmem>>, vector<16x24xf32>,
    return
  }
}

</mosaic_0001>

<bundles_post_ra>
// kernel: tpu_custom_call.1
= control target key start
LH: loop header
LB: loop body
LE: loop exit
PB: predicated region body
PF: predicated region fallthrough
CT: control target
= control target key end

     0   :  { %v2218_v1 = vmov 0   ;;  %v38_v37 = vlaneseq  ;;  %s2832_s0 = inlined_call_operand.vmem [shape: f32[16,1], index: 0, kind: input, shape index: {}]   ;;  %s2833_s1 = inlined_call_operand.vmem [shape: f32[1,2048], index: 1, kind: input, shape index: {}]   ;;  %s2834_s2 = inlined_call_operand.vmem [shape: f32[1,2048], index: 2, kind: input, shape index: {}]   ;;  %s2835_s3 = inlined_call_operand.vmem [shape: bf16[2048,24], index: 3, kind: input, shape index: {}]   ;;  %s2836_s4 = inlined_call_operand.vmem [shape: f32[1,24], index: 4, kind: input, shape index: {}]   ;;  %s2837_s5 = inlined_call_operand.hbm [shape: f32[16,24], index: 5, kind: output, shape index: {}]  }
   0x1   :  { %v22_v0 = vld [vmem:[%s2832_s0] sm:$0xff]  ;;  %2001 = vset.pattern.permute.xlu0 %v2218_v1  ;;  %v23_v2 = vld [vmem:[%s2832_s0 + $0x8] sm:$0xff]  ;;  %v2010_v11 = vld [vmem:[%s2835_s3 + $0x50] sm:$0xff]  }
   0x2   :  { %v2002_v3 = vld [vmem:[%s2835_s3 + $0x40] sm:$0xff]   ;;  %28 = vperm.xlu0 %2001, %v22_v0   ;;  %v2006_v7 = vld [vmem:[%s2835_s3 + $0x48] sm:$0xff]   ;;  %v2011_v12 = vld [vmem:[%s2835_s3 + $0xd0] sm:$0xff]   ;;  %v39_v38 = vshrl.u32 %v38_v37, 7 }
   0x3   :  { %v2003_v4 = vld [vmem:[%s2835_s3 + $0xc0] sm:$0xff]   ;;  %1821 = vmatprep.subr.bf16.mxu0 %v2002_v3  ;;  %v2007_v8 = vld [vmem:[%s2835_s3 + $0xc8] sm:$0xff]   ;;  %v2012_v13 = vld [vmem:[%s2835_s3 + $0x10] sm:$0xff]  }
   0x4   :  { %v2004_v5 = vld [vmem:[%s2835_s3] sm:$0xff]   ;;  %1843 = vmatprep.subr.bf16.mxu1 %v2003_v4  ;;  %v2008_v9 = vld [vmem:[%s2835_s3 + $0x8] sm:$0xff]   ;;  %v2013_v14 = vld [vmem:[%s2835_s3 + $0x90] sm:$0xff]   ;;  %v2360_v39 = vsub.s32 1, %v39_v38  ;;  %v2362_v40 = vsub.s32 3, %v39_v38  ;;  %v40_v41 = vsub.s32 0, %v39_v38 }
   0x5   :  { %v2005_v6 = vld [vmem:[%s2835_s3 + $0x80] sm:$0xff]   ;;  %1822 = vmatpush3.bf16.msra.mxu0 %v2004_v5  ;;  %v2009_v10 = vld [vmem:[%s2835_s3 + $0x88] sm:$0xff]   ;;  %v2014_v15 = vld [vmem:[%s2835_s3 + $0x58] sm:$0xff]   ;;  %v48_v42 = vsub.s32 2, %v39_v38  ;;  %v60_v45 = vsub.s32 5, %v39_v38  ;;  %v68_v50 = vsub.s32 7, %v39_v38 }
   0x6   :  { %33 = vperm.xlu0 %2001, %v23_v2   ;;  %1844 = vmatpush3.bf16.msra.mxu1 %v2005_v6  ;;  %v2015_v16 = vld [vmem:[%s2835_s3 + $0xd8] sm:$0xff]   ;;  %v2018_v19 = vld [vmem:[%s2835_s3 + $0x60] sm:$0xff]   ;;  %v2022_v23 = vld [vmem:[%s2835_s3 + $0x68] sm:$0xff]   ;;  %v2389_v57 = vsub.s32 4, %v39_v38 }
   0x7   :  { %1823 = vmatprep.subr.bf16.mxu0 %v2006_v7  ;;  %1845 = vmatprep.subr.bf16.mxu1 %v2007_v8  ;;  %v2016_v17 = vld [vmem:[%s2835_s3 + $0x18] sm:$0xff]   ;;  %v2019_v20 = vld [vmem:[%s2835_s3 + $0xe0] sm:$0xff]   ;;  %v2023_v24 = vld [vmem:[%s2835_s3 + $0xe8] sm:$0xff]  }
   0x8   :  { %v2017_v18 = vld [vmem:[%s2835_s3 + $0x98] sm:$0xff]   ;;  %v2020_v21 = vld [vmem:[%s2835_s3 + $0x20] sm:$0xff]   ;;  %v2024_v25 = vld [vmem:[%s2835_s3 + $0x28] sm:$0xff]  }
   0x9   :  { %1824 = vmatpush3.bf16.msra.mxu0 %v2008_v9  ;;  %v2021_v22 = vld [vmem:[%s2835_s3 + $0xa0] sm:$0xff]   ;;  %v2025_v26 = vld [vmem:[%s2835_s3 + $0xa8] sm:$0xff]   ;;  %v2026_v27 = vld [vmem:[%s2835_s3 + $0x70] sm:$0xff]  }
   0xa   :  { %1846 = vmatpush3.bf16.msra.mxu1 %v2009_v10  ;;  %1825 = vmatprep.subr.bf16.mxu0 %v2010_v11  ;;  %v2027_v28 = vld [vmem:[%s2835_s3 + $0xf0] sm:$0xff]   ;;  %v2030_v31 = vld [vmem:[%s2835_s3 + $0x78] sm:$0xff]   ;;  %v2034_v35 = vld [vmem:[%s2835_s3 + $0x140] sm:$0xff]  }
   0xb   :  { %1847 = vmatprep.subr.bf16.mxu1 %v2011_v12  ;;  %v2028_v29 = vld [vmem:[%s2835_s3 + $0x30] sm:$0xff]   ;;  %v2031_v32 = vld [vmem:[%s2835_s3 + $0xf8] sm:$0xff]   ;;  %v2035_v36 = vld [vmem:[%s2835_s3 + $0x1c0] sm:$0xff]  }
   0xc   :  { %v2029_v30 = vld [vmem:[%s2835_s3 + $0xb0] sm:$0xff]   ;;  %v2032_v33 = vld [vmem:[%s2835_s3 + $0x38] sm:$0xff]   ;;  %v2367_v43 = vld [vmem:[%s2833_s1] sm:$0xff] }
   0xd   :  { %1826 = vmatpush3.bf16.msra.mxu0 %v2012_v13  ;;  %v2033_v34 = vld [vmem:[%s2835_s3 + $0xb8] sm:$0xff]   ;;  %v2372_v44 = vld [vmem:[%s2834_s2] sm:$0xff]  ;;  %v45_v46 = vrot.slane %v2367_v43, %v2360_v39  ;;  %v53_v47 = vrot.slane %v2367_v43, %v2362_v40  ;;  %v41_v48 = vrot.slane %v2367_v43, %v40_v41  ;;  %v49_v49 = vrot.slane %v2367_v43, %v48_v42  ;;  %v2394_v58 = vld [vmem:[%s2833_s1 + $0x8] sm:$0xff] }
   0xe   :  { %1848 = vmatpush3.bf16.msra.mxu1 %v2013_v14  ;;  %1827 = vmatprep.subr.bf16.mxu0 %v2014_v15  ;;  %v161_v51 = vrot.slane %v2372_v44, %v2360_v39  ;;  %v169_v52 = vrot.slane %v2372_v44, %v2362_v40  ;;  %v157_v53 = vrot.slane %v2372_v44, %v40_v41  ;;  %v2403_v63 = vld [vmem:[%s2834_s2 + $0x8] sm:$0xff] }
   0xf   :  { %1849 = vmatprep.subr.bf16.mxu1 %v2015_v16  ;;  %v165_v55 = vrot.slane %v2372_v44, %v48_v42  ;;  %v61_v56 = vrot.slane %v2367_v43, %v60_v45 }
  0x11   :  { %1828 = vmatpush3.bf16.msra.mxu0 %v2016_v17 }
  0x12   :  { %1850 = vmatpush3.bf16.msra.mxu1 %v2017_v18  ;;  %1829 = vmatprep.subr.bf16.mxu0 %v2018_v19 }
  0x13   :  { %1851 = vmatprep.subr.bf16.mxu1 %v2019_v20 }
  0x15   :  { %1830 = vmatpush3.bf16.msra.mxu0 %v2020_v21 }
  0x16   :  { %1852 = vmatpush3.bf16.msra.mxu1 %v2021_v22  ;;  %1831 = vmatprep.subr.bf16.mxu0 %v2022_v23 }
  0x17   :  { %1853 = vmatprep.subr.bf16.mxu1 %v2023_v24 }
  0x19   :  { %1832 = vmatpush3.bf16.msra.mxu0 %v2024_v25 }
  0x1a   :  { %1854 = vmatpush3.bf16.msra.mxu1 %v2025_v26  ;;  %1833 = vmatprep.subr.bf16.mxu0 %v2026_v27 }
  0x1b   :  { %1855 = vmatprep.subr.bf16.mxu1 %v2027_v28 }
  0x1d   :  { %1834 = vmatpush3.bf16.msra.mxu0 %v2028_v29 }
  0x1e   :  { %1856 = vmatpush3.bf16.msra.mxu1 %v2029_v30  ;;  %1835 = vmatprep.subr.bf16.mxu0 %v2030_v31 }
  0x1f   :  { %1857 = vmatprep.subr.bf16.mxu1 %v2031_v32 }
  0x21   :  { %1836 = vmatpush3.bf16.msra.mxu0 %v2032_v33 }
  0x22   :  { %1858 = vmatpush3.bf16.msra.mxu1 %v2033_v34  ;;  %1865 = vmatprep.subr.bf16.mxu0 %v2034_v35 }
  0x23   :  { %1887 = vmatprep.subr.bf16.mxu1 %v2035_v36 }
  0x81   :  { %v2385_v54 = vpop.permute.xlu0 %28 }
  0x82   :  { %v119_v59 = vmul.f32 %v45_v46, %v2385_v54  ;;  %v121_v60 = vmul.f32 %v53_v47, %v2385_v54  ;;  %v118_v61 = vmul.f32 %v41_v48, %v2385_v54  ;;  %v120_v62 = vmul.f32 %v49_v49, %v2385_v54 }
  0x83   :  { %10 = vsyncpa [#allocation3], 0  ;;  %v177_v0 = vrot.slane %v2372_v44, %v60_v45  ;;  %v69_v1 = vrot.slane %v2367_v43, %v68_v50  ;;  %v185_v2 = vrot.slane %v2372_v44, %v68_v50  ;;  %v2408_v3 = vsub.s32 6, %v39_v38 }
  0x84   :  { %v235_v4 = vadd.f32 %v161_v51, %v119_v59  ;;  %v237_v5 = vadd.f32 %v169_v52, %v121_v60  ;;  %v234_v6 = vadd.f32 %v157_v53, %v118_v61  ;;  %v73_v7 = vrot.slane %v2394_v58, %v40_v41 }
  0x85   :  { %v2411_v8 = vpop.permute.xlu0 %33  ;;  %v236_v9 = vadd.f32 %v165_v55, %v120_v62  ;;  %v123_v10 = vmul.f32 %v61_v56, %v2385_v54  ;;  %v189_v11 = vrot.slane %v2403_v63, %v40_v41  ;;  %v81_v12 = vrot.slane %v2394_v58, %v48_v42 }
  0x86   :  { %v135_v13 = vmul.f32 %v45_v46, %v2411_v8  ;;  %2130 = vtanh.f32 %v235_v4  ;;  %v137_v14 = vmul.f32 %v53_v47, %v2411_v8  ;;  %v134_v15 = vmul.f32 %v41_v48, %v2411_v8 }
  0x87   :  { %2132 = vtanh.f32 %v237_v5  ;;  %v136_v16 = vmul.f32 %v49_v49, %v2411_v8  ;;  %v139_v17 = vmul.f32 %v61_v56, %v2411_v8  ;;  %v125_v18 = vmul.f32 %v69_v1, %v2385_v54 }
  0x88   :  { %v251_v19 = vadd.f32 %v161_v51, %v135_v13  ;;  %v253_v20 = vadd.f32 %v169_v52, %v137_v14  ;;  %v250_v21 = vadd.f32 %v157_v53, %v134_v15  ;;  %2134 = vtanh.f32 %v234_v6  ;;  %v2036_v15 = vld [vmem:[%s2835_s3 + $0x100] sm:$0xff]  }
  0x89   :  { %v252_v22 = vadd.f32 %v165_v55, %v136_v16  ;;  %2136 = vtanh.f32 %v236_v9  ;;  %v141_v23 = vmul.f32 %v69_v1, %v2411_v8  ;;  %v197_v24 = vrot.slane %v2403_v63, %v48_v42 }
  0x8a   :  { %2138 = vtanh.f32 %v251_v19  ;;  %v239_v25 = vadd.f32 %v177_v0, %v123_v10  ;;  %v93_v26 = vrot.slane %v2394_v58, %v60_v45  ;;  %v209_v27 = vrot.slane %v2403_v63, %v60_v45  ;;  %v2037_v19 = vld [vmem:[%s2835_s3 + $0x180] sm:$0xff]  }
  0x8b   :  { %2140 = vtanh.f32 %v253_v20  ;;  %v255_v28 = vadd.f32 %v177_v0, %v139_v17  ;;  %v101_v29 = vrot.slane %v2394_v58, %v68_v50  ;;  %v217_v30 = vrot.slane %v2403_v63, %v68_v50  ;;  %v2038_v20 = vld [vmem:[%s2835_s3 + $0x148] sm:$0xff]  }
  0x8c   :  { %2142 = vtanh.f32 %v250_v21  ;;  %v241_v31 = vadd.f32 %v185_v2, %v125_v18  ;;  %v89_v32 = vrot.slane %v2394_v58, %v2389_v57  ;;  %v205_v33 = vrot.slane %v2403_v63, %v2389_v57 }
  0x8d   :  { %2144 = vtanh.f32 %v252_v22  ;;  %v257_v34 = vadd.f32 %v185_v2, %v141_v23  ;;  %v97_v35 = vrot.slane %v2394_v58, %v2408_v3  ;;  %v213_v36 = vrot.slane %v2403_v63, %v2408_v3  ;;  %v2039_v23 = vld [vmem:[%s2835_s3 + $0x1c8] sm:$0xff]  }
  0x8e   :  { %2146 = vtanh.f32 %v239_v25  ;;  %v126_v37 = vmul.f32 %v73_v7, %v2385_v54  ;;  %v142_v38 = vmul.f32 %v73_v7, %v2411_v8  ;;  %v128_v41 = vmul.f32 %v81_v12, %v2385_v54 }
  0x8f   :  { %2148 = vtanh.f32 %v255_v28  ;;  %v144_v42 = vmul.f32 %v81_v12, %v2411_v8  ;;  %v131_v45 = vmul.f32 %v93_v26, %v2385_v54  ;;  %v147_v46 = vmul.f32 %v93_v26, %v2411_v8 }
  0x90   :  { %v2131_v47 = vpop.eup %2130  ;;  %2150 = vtanh.f32 %v241_v31  ;;  %v242_v48 = vadd.f32 %v189_v11, %v126_v37  ;;  %v258_v49 = vadd.f32 %v189_v11, %v142_v38  ;;  %v244_v50 = vadd.f32 %v197_v24, %v128_v41  ;;  %v2046_v37 = vld [vmem:[%s2835_s3 + $0x158] sm:$0xff]  }
  0x91   :  { %v2133_v51 = vpop.eup %2132  ;;  %2152 = vtanh.f32 %v257_v34  ;;  %v260_v52 = vadd.f32 %v197_v24, %v144_v42  ;;  %v247_v53 = vadd.f32 %v209_v27, %v131_v45  ;;  %v263_v55 = vadd.f32 %v209_v27, %v147_v46  ;;  %v2040_v27 = vld [vmem:[%s2835_s3 + $0x108] sm:$0xff]   ;;  %v2044_v34 = vld [vmem:[%s2835_s3 + $0x110] sm:$0xff]   ;;  %v2047_v38 = vld [vmem:[%s2835_s3 + $0x1d8] sm:$0xff]  }
  0x92   :  { %v2135_v56 = vpop.eup %2134  ;;  %v133_v59 = vmul.f32 %v101_v29, %v2385_v54  ;;  %v149_v60 = vmul.f32 %v101_v29, %v2411_v8  ;;  %v130_v61 = vmul.f32 %v89_v32, %v2385_v54  ;;  %v146_v0 = vmul.f32 %v89_v32, %v2411_v8  ;;  %v2041_v29 = vld [vmem:[%s2835_s3 + $0x188] sm:$0xff]   ;;  %v2043_v32 = vld [vmem:[%s2835_s3 + $0x1d0] sm:$0xff]   ;;  %v2048_v45 = vld [vmem:[%s2835_s3 + $0x118] sm:$0xff]  }
  0x93   :  { %v2137_v62 = vpop.eup %2136  ;;  %v132_v1 = vmul.f32 %v97_v35, %v2385_v54  ;;  %v148_v2 = vmul.f32 %v97_v35, %v2411_v8  ;;  %2154 = vtanh.f32 %v242_v48  ;;  %v65_v35 = vrot.slane %v2367_v43, %v2408_v3 }
  0x94   :  { %v2139_v4 = vpop.eup %2138  ;;  %v249_v5 = vadd.f32 %v217_v30, %v133_v59  ;;  %v265_v6 = vadd.f32 %v217_v30, %v149_v60  ;;  %v246_v7 = vadd.f32 %v205_v33, %v130_v61  ;;  %v2448_v11 = vadd.f32 %v205_v33, %v146_v0  ;;  %v2042_v30 = vld [vmem:[%s2835_s3 + $0x150] sm:$0xff]   ;;  %v2052_v60 = vld [vmem:[%s2835_s3 + $0x120] sm:$0xff]  }
  0x95   :  { %v2141_v9 = vpop.eup %2140  ;;  %v299_v10 = vpack.c.bf16 %v2139_v4, %v2131_v47  ;;  %v2450_v12 = vadd.f32 %v213_v36, %v132_v1  ;;  %v2455_v16 = vadd.f32 %v213_v36, %v148_v2  ;;  %2156 = vtanh.f32 %v258_v49  ;;  %v2045_v36 = vld [vmem:[%s2835_s3 + $0x190] sm:$0xff]   ;;  %v2050_v49 = vld [vmem:[%s2835_s3 + $0x160] sm:$0xff]   ;;  %v2054_v4 = vld [vmem:[%s2835_s3 + $0x168] sm:$0xff]  }
  0x96   :  { %v2143_v13 = vpop.eup %2142  ;;  %v301_v14 = vpack.c.bf16 %v2141_v9, %v2133_v51  ;;  %v57_v33 = vrot.slane %v2367_v43, %v2389_v57  ;;  %2158 = vtanh.f32 %v244_v50  ;;  %v173_v43 = vrot.slane %v2372_v44, %v2389_v57  ;;  %v2049_v57 = vld [vmem:[%s2835_s3 + $0x198] sm:$0xff]   ;;  %v2055_v9 = vld [vmem:[%s2835_s3 + $0x1e8] sm:$0xff]  }
  0x97   :  { %v2145_v17 = vpop.eup %2144  ;;  %1377 = vmatprep.mubr.bf16.mxu0 %v299_v10  ;;  %v298_v18 = vpack.c.bf16 %v2143_v13, %v2135_v56  ;;  %2160 = vtanh.f32 %v260_v52  ;;  %v124_v46 = vmul.f32 %v65_v35, %v2385_v54  ;;  %v181_v47 = vrot.slane %v2372_v44, %v2408_v3  ;;  %v2051_v3 = vld [vmem:[%s2835_s3 + $0x1e0] sm:$0xff]  }
  0x98   :  { %v2147_v21 = vpop.eup %2146  ;;  %1418 = vmatprep.mubr.bf16.mxu1 %v301_v14  ;;  %v300_v22 = vpack.c.bf16 %v2145_v17, %v2137_v62  ;;  %2162 = vtanh.f32 %v247_v53  ;;  %v122_v41 = vmul.f32 %v57_v33, %v2385_v54  ;;  %v138_v42 = vmul.f32 %v57_v33, %v2411_v8  ;;  %v2058_v17 = vld [vmem:[%s2835_s3 + $0x170] sm:$0xff]  }
  0x99   :  { %v2149_v24 = vpop.eup %2148  ;;  %1378 = vmatmul.mubr.bf16.vlgmr.msra.gmra.mrb[0].mxu0 %v298_v18  ;;  %2164 = vtanh.f32 %v263_v55  ;;  %v77_v48 = vrot.slane %v2394_v58, %v2360_v39  ;;  %v140_v50 = vmul.f32 %v65_v35, %v2411_v8  ;;  %v85_v51 = vrot.slane %v2394_v58, %v2362_v40  ;;  %v2066_v35 = vld [vmem:[%s2835_s3 + $0x240] sm:$0xff]  }
  0x9a   :  { %v2151_v25 = vpop.eup %2150  ;;  %1419 = vmatmul.mubr.bf16.vlgmr.msra.gmra.mrb[0].mxu1 %v300_v22  ;;  %1866 = vmatpush3.bf16.msra.mxu0 %v2036_v15  ;;  %v303_v26 = vpack.c.bf16 %v2149_v24, %v2147_v21  ;;  %2166 = vtanh.f32 %v249_v5  ;;  %v238_v52 = vadd.f32 %v173_v43, %v122_v41  ;;  %v254_v56 = vadd.f32 %v173_v43, %v138_v42  ;;  %v2060_v24 = vld [vmem:[%s2835_s3 + $0x130] sm:$0xff]   ;;  %v2068_v43 = vld [vmem:[%s2835_s3 + $0x200] sm:$0xff]  }
  0x9b   :  { %v2153_v28 = vpop.eup %2152  ;;  %1888 = vmatpush3.bf16.msra.mxu1 %v2037_v19  ;;  %1867 = vmatprep.subr.bf16.mxu0 %v2038_v20  ;;  %2168 = vtanh.f32 %v265_v6  ;;  %v143_v53 = vmul.f32 %v77_v48, %v2411_v8  ;;  %v145_v59 = vmul.f32 %v85_v51, %v2411_v8  ;;  %v240_v61 = vadd.f32 %v181_v47, %v124_v46  ;;  %v2053_v8 = vld [vmem:[%s2835_s3 + $0x1a0] sm:$0xff]   ;;  %v2059_v20 = vld [vmem:[%s2835_s3 + $0x1f0] sm:$0xff]  }
  0x9c   :  { %1459 = vmatprep.mubr.bf16.mxu0 %v303_v26  ;;  %v305_v31 = vpack.c.bf16 %v2153_v28, %v2151_v25  ;;  %1889 = vmatprep.subr.bf16.mxu1 %v2039_v23  ;;  %2170 = vtanh.f32 %v246_v7  ;;  %v127_v62 = vmul.f32 %v77_v48, %v2385_v54  ;;  %v193_v0 = vrot.slane %v2403_v63, %v2360_v39  ;;  %v2062_v28 = vld [vmem:[%s2835_s3 + $0x178] sm:$0xff]   ;;  %v2069_v46 = vld [vmem:[%s2835_s3 + $0x280] sm:$0xff]  }
  0x9d   :  { %2172 = vtanh.f32 %v2448_v11  ;;  %v2516_v44 = vpop.eup %2154  ;;  %v256_v5 = vadd.f32 %v181_v47, %v140_v50  ;;  %v129_v6 = vmul.f32 %v85_v51, %v2385_v54  ;;  %v201_v39 = vrot.slane %v2403_v63, %v2362_v40  ;;  %v2056_v40 = vld [vmem:[%s2835_s3 + $0x128] sm:$0xff]  }
  0x9e   :  { %1500 = vmatprep.mubr.bf16.mxu1 %v305_v31  ;;  %1868 = vmatpush3.bf16.msra.mxu0 %v2040_v27  ;;  %2174 = vtanh.f32 %v2450_v12  ;;  %v259_v10 = vadd.f32 %v193_v0, %v143_v53  ;;  %v243_v63 = vadd.f32 %v193_v0, %v127_v62  ;;  %v2061_v27 = vld [vmem:[%s2835_s3 + $0x1b0] sm:$0xff]   ;;  %v2071_v51 = vld [vmem:[%s2835_s3 + $0x2c8] sm:$0xff]   ;;  %v2078_v62 = vld [vmem:[%s2835_s3 + $0x258] sm:$0xff]   ;;  %vm1673_vm0 = vcmask 195584  }
  0x9f   :  { %1890 = vmatpush3.bf16.msra.mxu1 %v2041_v29  ;;  %1869 = vmatprep.subr.bf16.mxu0 %v2042_v30  ;;  %v2523_v55 = vpop.eup %2156  ;;  %2176 = vtanh.f32 %v2455_v16  ;;  %v261_v13 = vadd.f32 %v201_v39, %v145_v59  ;;  %v2057_v16 = vld [vmem:[%s2835_s3 + $0x1a8] sm:$0xff]   ;;  %v245_v18 = vadd.f32 %v201_v39, %v129_v6  ;;  %v2063_v29 = vld [vmem:[%s2835_s3 + $0x1f8] sm:$0xff]   ;;  %v2075_v59 = vld [vmem:[%s2835_s3 + $0x2d0] sm:$0xff]  }
  0xa0   :  { %1891 = vmatprep.subr.bf16.mxu1 %v2043_v32  ;;  %v2527_v58 = vpop.eup %2158  ;;  %v306_v1 = vpack.c.bf16 %v2523_v55, %v2516_v44  ;;  %2178 = vtanh.f32 %v238_v52  ;;  %v2064_v32 = vld [vmem:[%s2835_s3 + $0x138] sm:$0xff]   ;;  %v2072_v52 = vld [vmem:[%s2835_s3 + $0x208] sm:$0xff]   ;;  %v2083_v6 = vld [vmem:[%s2835_s3 + $0x2e0] sm:$0xff]  }
  0xa1   :  { %v2537_v2 = vpop.eup %2160  ;;  %2180 = vtanh.f32 %v254_v56  ;;  %v2073_v53 = vld [vmem:[%s2835_s3 + $0x288] sm:$0xff]   ;;  %v2074_v56 = vld [vmem:[%s2835_s3 + $0x250] sm:$0xff]   ;;  %v2079_v0 = vld [vmem:[%s2835_s3 + $0x2d8] sm:$0xff]  }
  0xa2   :  { %1870 = vmatpush3.bf16.msra.mxu0 %v2044_v34  ;;  %v2548_v7 = vpop.eup %2162  ;;  %v308_v11 = vpack.c.bf16 %v2537_v2, %v2527_v58  ;;  %2182 = vtanh.f32 %v240_v61  ;;  %v2065_v34 = vld [vmem:[%s2835_s3 + $0x1b8] sm:$0xff]   ;;  %v2077_v61 = vld [vmem:[%s2835_s3 + $0x290] sm:$0xff]   ;;  %v2084_v39 = vld [vmem:[%s2835_s3 + $0x220] sm:$0xff]  }
  0xa3   :  { %1892 = vmatpush3.bf16.msra.mxu1 %v2045_v36  ;;  %1871 = vmatprep.subr.bf16.mxu0 %v2046_v37  ;;  %v2555_v12 = vpop.eup %2164  ;;  %2184 = vtanh.f32 %v256_v5  ;;  %v2067_v37 = vld [vmem:[%s2835_s3 + $0x2c0] sm:$0xff]   ;;  %v2105_v44 = vld [vmem:[%s2835_s3 + $0x388] sm:$0xff]   ;;  %v2106_v55 = vld [vmem:[%s2835_s3 + $0x350] sm:$0xff]  }
  0xa4   :  { %1893 = vmatprep.subr.bf16.mxu1 %v2047_v38  ;;  %v2557_v54 = vpop.eup %2166  ;;  %v311_v14 = vpack.c.bf16 %v2555_v12, %v2548_v7  ;;  %2186 = vtanh.f32 %v259_v10  ;;  %v2082_v5 = vld [vmem:[%s2835_s3 + $0x260] sm:$0xff]   ;;  %v2086_v10 = vld [vmem:[%s2835_s3 + $0x268] sm:$0xff]   ;;  %v2107_v58 = vld [vmem:[%s2835_s3 + $0x3d0] sm:$0xff]  }
  0xa5   :  { %v2564_v15 = vpop.eup %2168  ;;  %2188 = vtanh.f32 %v261_v13  ;;  %v2087_v13 = vld [vmem:[%s2835_s3 + $0x2e8] sm:$0xff]   ;;  %v2109_v2 = vld [vmem:[%s2835_s3 + $0x390] sm:$0xff]   ;;  %v2110_v7 = vld [vmem:[%s2835_s3 + $0x358] sm:$0xff]  }
  0xa6   :  { %1872 = vmatpush3.bf16.msra.mxu0 %v2048_v45  ;;  %v2572_v19 = vpop.eup %2170  ;;  %v313_v21 = vpack.c.bf16 %v2564_v15, %v2557_v54  ;;  %2190 = vtanh.f32 %v243_v63  ;;  %v2089_v63 = vld [vmem:[%s2835_s3 + $0x2a8] sm:$0xff]   ;;  %v2112_v12 = vld [vmem:[%s2835_s3 + $0x318] sm:$0xff]   ;;  %v2115_v15 = vld [vmem:[%s2835_s3 + $0x3e0] sm:$0xff]  }
  0xa7   :  { %1894 = vmatpush3.bf16.msra.mxu1 %v2049_v57  ;;  %1873 = vmatprep.subr.bf16.mxu0 %v2050_v49  ;;  %v2579_v22 = vpop.eup %2172  ;;  %2192 = vtanh.f32 %v245_v18  ;;  %v2070_v57 = vld [vmem:[%s2835_s3 + $0x248] sm:$0xff]   ;;  %v2092_v18 = vld [vmem:[%s2835_s3 + $0x230] sm:$0xff]   ;;  %v2113_v54 = vld [vmem:[%s2835_s3 + $0x398] sm:$0xff]  }
  0xa8   :  { %1895 = vmatprep.subr.bf16.mxu1 %v2051_v3  ;;  %v2581_v23 = vpop.eup %2174  ;;  %v310_v25 = vpack.c.bf16 %v2579_v22, %v2572_v19 }
  0xa9   :  { %v2588_v26 = vpop.eup %2176 }
  0xaa   :  { %1874 = vmatpush3.bf16.msra.mxu0 %v2052_v60  ;;  %v312_v30 = vpack.c.bf16 %v2588_v26, %v2581_v23  ;;  %v2179_v31 = vpop.eup %2178  ;;  %v2076_v60 = vld [vmem:[%s2835_s3 + $0x210] sm:$0xff]  }
  0xab   :  { %1896 = vmatpush3.bf16.msra.mxu1 %v2053_v8  ;;  %1875 = vmatprep.subr.bf16.mxu0 %v2054_v4  ;;  %v2181_v33 = vpop.eup %2180  ;;  %v2080_v8 = vld [vmem:[%s2835_s3 + $0x218] sm:$0xff]  }
  0xac   :  { %1897 = vmatprep.subr.bf16.mxu1 %v2055_v9  ;;  %v2183_v36 = vpop.eup %2182  ;;  %v302_v45 = vpack.c.bf16 %v2181_v33, %v2179_v31  ;;  %v2081_v4 = vld [vmem:[%s2835_s3 + $0x298] sm:$0xff]   ;;  %v2085_v9 = vld [vmem:[%s2835_s3 + $0x2a0] sm:$0xff]  }
  0xad   :  { %v2185_v38 = vpop.eup %2184  ;;  %v2098_v31 = vld [vmem:[%s2835_s3 + $0x340] sm:$0xff]  }
  0xae   :  { %1876 = vmatpush3.bf16.msra.mxu0 %v2056_v40  ;;  %v2187_v41 = vpop.eup %2186  ;;  %v304_v48 = vpack.c.bf16 %v2185_v38, %v2183_v36  ;;  %v2088_v40 = vld [vmem:[%s2835_s3 + $0x228] sm:$0xff]   ;;  %v2100_v33 = vld [vmem:[%s2835_s3 + $0x300] sm:$0xff]  }
  0xaf   :  { %1898 = vmatpush3.bf16.msra.mxu1 %v2057_v16  ;;  %1877 = vmatprep.subr.bf16.mxu0 %v2058_v17  ;;  %v2189_v42 = vpop.eup %2188  ;;  %v2090_v16 = vld [vmem:[%s2835_s3 + $0x270] sm:$0xff]   ;;  %v2103_v36 = vld [vmem:[%s2835_s3 + $0x3c8] sm:$0xff]   ;;  %v2117_v38 = vld [vmem:[%s2835_s3 + $0x3a0] sm:$0xff]  }
  0xb0   :  { %1899 = vmatprep.subr.bf16.mxu1 %v2059_v20  ;;  %v2191_v47 = vpop.eup %2190  ;;  %v2091_v17 = vld [vmem:[%s2835_s3 + $0x2f0] sm:$0xff]  }
  0xb1   :  { %v2193_v49 = vpop.eup %2192  ;;  %v307_v50 = vpack.c.bf16 %v2187_v41, %v2191_v47  ;;  %v2093_v20 = vld [vmem:[%s2835_s3 + $0x2b0] sm:$0xff]   ;;  %v2118_v41 = vld [vmem:[%s2835_s3 + $0x368] sm:$0xff]  }
  0xb2   :  { %1878 = vmatpush3.bf16.msra.mxu0 %v2060_v24  ;;  %v309_v3 = vpack.c.bf16 %v2189_v42, %v2193_v49  ;;  %v2094_v24 = vld [vmem:[%s2835_s3 + $0x278] sm:$0xff]   ;;  %v2120_v42 = vld [vmem:[%s2835_s3 + $0x328] sm:$0xff]   ;;  %v2123_v47 = vld [vmem:[%s2835_s3 + $0x3f0] sm:$0xff]  }
  0xb3   :  { %1900 = vmatpush3.bf16.msra.mxu1 %v2061_v27  ;;  %1879 = vmatprep.subr.bf16.mxu0 %v2062_v28  ;;  %v2095_v27 = vld [vmem:[%s2835_s3 + $0x2f8] sm:$0xff]  }
  0xb4   :  { %1901 = vmatprep.subr.bf16.mxu1 %v2063_v29  ;;  %v2096_v28 = vld [vmem:[%s2835_s3 + $0x238] sm:$0xff]  }
  0xb5   :  { %v2097_v29 = vld [vmem:[%s2835_s3 + $0x2b8] sm:$0xff]  }
  0xb6   :  { %1880 = vmatpush3.bf16.msra.mxu0 %v2064_v32  ;;  %v2099_v32 = vld [vmem:[%s2835_s3 + $0x3c0] sm:$0xff]   ;;  %v2126_v49 = vld [vmem:[%s2835_s3 + $0x378] sm:$0xff]  }
  0xb7   :  { %1902 = vmatpush3.bf16.msra.mxu1 %v2065_v34  ;;  %1909 = vmatprep.subr.bf16.mxu0 %v2066_v35  ;;  %v2101_v34 = vld [vmem:[%s2835_s3 + $0x380] sm:$0xff]   ;;  %v2102_v35 = vld [vmem:[%s2835_s3 + $0x348] sm:$0xff]  }
  0xb8   :  { %1931 = vmatprep.subr.bf16.mxu1 %v2067_v37  ;;  %v2104_v37 = vld [vmem:[%s2835_s3 + $0x308] sm:$0xff]  }
  0xb9   :  { %1460 = vmatmul.mubr.bf16.vlgmr.msra.gmra.mrb[4].mxu0 %v302_v45  ;;  %v2121_v45 = vld [vmem:[%s2835_s3 + $0x3a8] sm:$0xff]  }
  0xba   :  { %1501 = vmatmul.mubr.bf16.vlgmr.msra.gmra.mrb[4].mxu1 %v304_v48  ;;  %1910 = vmatpush3.bf16.msra.mxu0 %v2068_v43  ;;  %v2119_v43 = vld [vmem:[%s2835_s3 + $0x3e8] sm:$0xff]   ;;  %v2124_v48 = vld [vmem:[%s2835_s3 + $0x330] sm:$0xff]  }
  0xbb   :  { %1541 = vmatprep.mubr.bf16.mxu0 %v307_v50  ;;  %1932 = vmatpush3.bf16.msra.mxu1 %v2069_v46  ;;  %v2122_v46 = vld [vmem:[%s2835_s3 + $0x370] sm:$0xff]   ;;  %v2127_v50 = vld [vmem:[%s2835_s3 + $0x3f8] sm:$0xff]  }
  0xbc   :  { %1582 = vmatprep.mubr.bf16.mxu1 %v309_v3  ;;  %1911 = vmatprep.subr.bf16.mxu0 %v2070_v57  ;;  %v2125_v57 = vld [vmem:[%s2835_s3 + $0x3b0] sm:$0xff]   ;;  %v2129_v3 = vld [vmem:[%s2835_s3 + $0x3b8] sm:$0xff]  }
  0xbd   :  { %1933 = vmatprep.subr.bf16.mxu1 %v2071_v51  ;;  %v2128_v51 = vld [vmem:[%s2835_s3 + $0x338] sm:$0xff]  }
  0xbe   :  { %1912 = vmatpush3.bf16.msra.mxu0 %v2072_v52 }
  0xbf   :  { %1934 = vmatpush3.bf16.msra.mxu1 %v2073_v53  ;;  %1913 = vmatprep.subr.bf16.mxu0 %v2074_v56  ;;  %v1692_v56 = vld [vmem:[%s2836_s4] ss:$0 sm:$0xff] }
  0xc0   :  { %1935 = vmatprep.subr.bf16.mxu1 %v2075_v59 }
  0xc2   :  { %1914 = vmatpush3.bf16.msra.mxu0 %v2076_v60 }
  0xc3   :  { %1936 = vmatpush3.bf16.msra.mxu1 %v2077_v61  ;;  %1915 = vmatprep.subr.bf16.mxu0 %v2078_v62 }
  0xc4   :  { %1937 = vmatprep.subr.bf16.mxu1 %v2079_v0 }
  0xc6   :  { %1916 = vmatpush3.bf16.msra.mxu0 %v2080_v8 }
  0xc7   :  { %1938 = vmatpush3.bf16.msra.mxu1 %v2081_v4  ;;  %1917 = vmatprep.subr.bf16.mxu0 %v2082_v5 }
  0xc8   :  { %1939 = vmatprep.subr.bf16.mxu1 %v2083_v6 }
  0xca   :  { %1918 = vmatpush3.bf16.msra.mxu0 %v2084_v39 }
  0xcb   :  { %1940 = vmatpush3.bf16.msra.mxu1 %v2085_v9  ;;  %1919 = vmatprep.subr.bf16.mxu0 %v2086_v10 }
  0xcc   :  { %1941 = vmatprep.subr.bf16.mxu1 %v2087_v13 }
  0xce   :  { %1920 = vmatpush3.bf16.msra.mxu0 %v2088_v40 }
  0xcf   :  { %1942 = vmatpush3.bf16.msra.mxu1 %v2089_v63  ;;  %1921 = vmatprep.subr.bf16.mxu0 %v2090_v16 }
  0xd0   :  { %1943 = vmatprep.subr.bf16.mxu1 %v2091_v17 }
  0xd2   :  { %1922 = vmatpush3.bf16.msra.mxu0 %v2092_v18 }
  0xd3   :  { %1944 = vmatpush3.bf16.msra.mxu1 %v2093_v20  ;;  %1923 = vmatprep.subr.bf16.mxu0 %v2094_v24 }
  0xd4   :  { %1945 = vmatprep.subr.bf16.mxu1 %v2095_v27 }
  0xd6   :  { %1924 = vmatpush3.bf16.msra.mxu0 %v2096_v28 }
  0xd7   :  { %1946 = vmatpush3.bf16.msra.mxu1 %v2097_v29  ;;  %1953 = vmatprep.subr.bf16.mxu0 %v2098_v31 }
  0xd8   :  { %1975 = vmatprep.subr.bf16.mxu1 %v2099_v32 }
  0xd9   :  { %1542 = vmatmul.mubr.bf16.vlgmr.msra.gmra.mrb[8].mxu0 %v306_v1  ;;  %v2108_v1 = vld [vmem:[%s2835_s3 + $0x310] sm:$0xff]  }
  0xda   :  { %1583 = vmatmul.mubr.bf16.vlgmr.msra.gmra.mrb[8].mxu1 %v308_v11  ;;  %1954 = vmatpush3.bf16.msra.mxu0 %v2100_v33  ;;  %v2111_v11 = vld [vmem:[%s2835_s3 + $0x3d8] sm:$0xff]  }
  0xdb   :  { %1623 = vmatprep.mubr.bf16.mxu0 %v311_v14  ;;  %1976 = vmatpush3.bf16.msra.mxu1 %v2101_v34  ;;  %v2114_v14 = vld [vmem:[%s2835_s3 + $0x360] sm:$0xff]  }
  0xdc   :  { %1664 = vmatprep.mubr.bf16.mxu1 %v313_v21  ;;  %1955 = vmatprep.subr.bf16.mxu0 %v2102_v35  ;;  %v2116_v21 = vld [vmem:[%s2835_s3 + $0x320] sm:$0xff]   ;;  %s2219_s3 = smov [#allocation2]  }
  0xdd   :  { %1977 = vmatprep.subr.bf16.mxu1 %v2103_v36  ;;  %s1681_s4 = sshll.u32 %s2219_s3, 4  ;;  %s1682_s4 = int_to_ptr.vmem [resolvable:$true] %s1681_s4 }
  0xde   :  { %1956 = vmatpush3.bf16.msra.mxu0 %v2104_v37  ;;  %s2194_s14 = scalar_lea.vmem %s1682_s4, 256  ;;  %p2199_p1 = scmp.lt.s32.totalorder %s1682_s4, %s1682_s4 }
  0xdf   :  { %1978 = vmatpush3.bf16.msra.mxu1 %v2105_v44  ;;  %1957 = vmatprep.subr.bf16.mxu0 %v2106_v55  ;;  %p2195_p0 = scmp.ne.s32.totalorder %s1682_s4, %s2194_s14  ;;  %p2200_p2 = scmp.lt.s32.totalorder %s2194_s14, %s2194_s14 }
  0xe0   :  { %1979 = vmatprep.subr.bf16.mxu1 %v2107_v58 }
  0xe1   :  { %p2201_p3 = por %p2200_p2, %p2199_p1 }
  0xe2   :  { %1958 = vmatpush3.bf16.msra.mxu0 %v2108_v1 }
  0xe3   :  { %1980 = vmatpush3.bf16.msra.mxu1 %v2109_v2  ;;  %1959 = vmatprep.subr.bf16.mxu0 %v2110_v7  ;;  %p2202_p4 = pnand %p2201_p3, %p2195_p0 }
  0xe4   :  { %1981 = vmatprep.subr.bf16.mxu1 %v2111_v11 }
  0xe6   :  { %1960 = vmatpush3.bf16.msra.mxu0 %v2112_v12 }
  0xe7   :  { %1982 = vmatpush3.bf16.msra.mxu1 %v2113_v54  ;;  %1961 = vmatprep.subr.bf16.mxu0 %v2114_v14 }
  0xe8   :  { %1983 = vmatprep.subr.bf16.mxu1 %v2115_v15 }
  0xea   :  { %1962 = vmatpush3.bf16.msra.mxu0 %v2116_v21 }
  0xeb   :  { %1984 = vmatpush3.bf16.msra.mxu1 %v2117_v38  ;;  %1963 = vmatprep.subr.bf16.mxu0 %v2118_v41 }
  0xec   :  { %1985 = vmatprep.subr.bf16.mxu1 %v2119_v43 }
  0xee   :  { %1964 = vmatpush3.bf16.msra.mxu0 %v2120_v42 }
  0xef   :  { %1986 = vmatpush3.bf16.msra.mxu1 %v2121_v45  ;;  %1965 = vmatprep.subr.bf16.mxu0 %v2122_v46 }
  0xf0   :  { %1987 = vmatprep.subr.bf16.mxu1 %v2123_v47 }
  0xf2   :  { %1966 = vmatpush3.bf16.msra.mxu0 %v2124_v48 }
  0xf3   :  { %1988 = vmatpush3.bf16.msra.mxu1 %v2125_v57  ;;  %1967 = vmatprep.subr.bf16.mxu0 %v2126_v49 }
  0xf4   :  { %1989 = vmatprep.subr.bf16.mxu1 %v2127_v50 }
  0xf6   :  { %1968 = vmatpush3.bf16.msra.mxu0 %v2128_v51 }
  0xf7   :  { %1990 = vmatpush3.bf16.msra.mxu1 %v2129_v3 }
  0xf9   :  { %1624 = vmatmul.mubr.bf16.vlgmr.msra.gmra.mrb[12].mxu0 %v310_v25 }
  0xfa   :  { %1665 = vmatmul.mubr.bf16.vlgmr.msra.gmra.mrb[12].mxu1 %v312_v30 }
 0x16c   :  { %v1837_v52 = vpop.f32.mrb[0].mxu0 }
 0x16d   :  { %v1859_v53 = vpop.f32.mrb[0].mxu1  ;;  %v1838_v59 = vpop.f32.mrb[1].mxu0 }
 0x16e   :  { %v1839_v60 = vadd.f32 %v1838_v59, %v1837_v52  ;;  %v1860_v61 = vpop.f32.mrb[1].mxu1  ;;  %v1840_v62 = vpop.f32.mrb[2].mxu0 }
 0x16f   :  { %v1861_v0 = vadd.f32 %v1860_v61, %v1859_v53  ;;  %v1862_v8 = vpop.f32.mrb[2].mxu1  ;;  %v1841_v4 = vpop.f32.mrb[3].mxu0 }
 0x170   :  { %v1380_v5 = vadd.f32 %v1839_v60, %v1692_v56  ;;  %v1842_v19 = vadd.f32 %v1841_v4, %v1840_v62  ;;  %v1863_v22 = vpop.f32.mrb[3].mxu1 }
 0x171   :  { %v1864_v25 = vadd.f32 %v1863_v22, %v1862_v8 }
 0x172   :  { %v1421_v6 = vadd.f32 %v1861_v0, %v1380_v5  ;;  %v1383_v23 = vadd.f32 %v1842_v19, %v1692_v56 }
 0x174   :  { %v1424_v26 = vadd.f32 %v1864_v25, %v1383_v23 }
 0x18c   :  { %v1881_v30 = vpop.f32.mrb[4].mxu0 }
 0x18d   :  { %v1903_v39 = vpop.f32.mrb[4].mxu1  ;;  %v1882_v9 = vpop.f32.mrb[5].mxu0 }
 0x18e   :  { %v1883_v10 = vadd.f32 %v1882_v9, %v1881_v30  ;;  %v1904_v13 = vpop.f32.mrb[5].mxu1  ;;  %v1884_v40 = vpop.f32.mrb[6].mxu0 }
 0x18f   :  { %v1905_v63 = vadd.f32 %v1904_v13, %v1903_v39  ;;  %v1906_v16 = vpop.f32.mrb[6].mxu1  ;;  %v1885_v17 = vpop.f32.mrb[7].mxu0 }
 0x190   :  { %v1462_v18 = vadd.f32 %v1883_v10, %v1421_v6  ;;  %v1886_v20 = vadd.f32 %v1885_v17, %v1884_v40  ;;  %v1907_v24 = vpop.f32.mrb[7].mxu1 }
 0x191   :  { %v1908_v27 = vadd.f32 %v1907_v24, %v1906_v16 }
 0x192   :  { %v1503_v28 = vadd.f32 %v1905_v63, %v1462_v18  ;;  %v1465_v29 = vadd.f32 %v1886_v20, %v1424_v26 }
 0x194   :  { %v1506_v31 = vadd.f32 %v1908_v27, %v1465_v29 }
 0x1ac   :  { %v1925_v32 = vpop.f32.mrb[8].mxu0 }
 0x1ad   :  { %v1947_v33 = vpop.f32.mrb[8].mxu1  ;;  %v1926_v34 = vpop.f32.mrb[9].mxu0 }
 0x1ae   :  { %v1927_v35 = vadd.f32 %v1926_v34, %v1925_v32  ;;  %v1948_v36 = vpop.f32.mrb[9].mxu1  ;;  %v1928_v37 = vpop.f32.mrb[10].mxu0 }
 0x1af   :  { %v1949_v44 = vadd.f32 %v1948_v36, %v1947_v33  ;;  %v1950_v55 = vpop.f32.mrb[10].mxu1  ;;  %v1929_v58 = vpop.f32.mrb[11].mxu0 }
 0x1b0   :  { %v1544_v1 = vadd.f32 %v1927_v35, %v1503_v28  ;;  %v1930_v2 = vadd.f32 %v1929_v58, %v1928_v37  ;;  %v1951_v7 = vpop.f32.mrb[11].mxu1 }
 0x1b1   :  { %v1952_v11 = vadd.f32 %v1951_v7, %v1950_v55 }
 0x1b2   :  { %v1585_v12 = vadd.f32 %v1949_v44, %v1544_v1  ;;  %v1547_v54 = vadd.f32 %v1930_v2, %v1506_v31 }
 0x1b4   :  { %v1588_v14 = vadd.f32 %v1952_v11, %v1547_v54 }
 0x1cc   :  { %v1969_v15 = vpop.f32.mrb[12].mxu0 }
 0x1cd   :  { %v1991_v21 = vpop.f32.mrb[12].mxu1  ;;  %v1970_v38 = vpop.f32.mrb[13].mxu0 }
 0x1ce   :  { %v1971_v41 = vadd.f32 %v1970_v38, %v1969_v15  ;;  %v1992_v43 = vpop.f32.mrb[13].mxu1  ;;  %v1972_v42 = vpop.f32.mrb[14].mxu0 }
 0x1cf   :  { %v1993_v45 = vadd.f32 %v1992_v43, %v1991_v21  ;;  %v1994_v46 = vpop.f32.mrb[14].mxu1  ;;  %v1973_v47 = vpop.f32.mrb[15].mxu0 }
 0x1d0   :  { %v1626_v48 = vadd.f32 %v1971_v41, %v1585_v12  ;;  %v1974_v57 = vadd.f32 %v1973_v47, %v1972_v42  ;;  %v1995_v49 = vpop.f32.mrb[15].mxu1 }
 0x1d1   :  { %v1996_v50 = vadd.f32 %v1995_v49, %v1994_v46 }
 0x1d2   :  { %v1667_v51 = vadd.f32 %v1993_v45, %v1626_v48  ;;  %v1629_v3 = vadd.f32 %v1974_v57, %v1588_v14 }
 0x1d4   :  { %1674 = vst.msk [vmem:[#allocation2] sm:$0xff] %vm1673_vm0, %v1667_v51  ;;  %v1670_v52 = vadd.f32 %v1996_v50, %v1629_v3 }
 0x1d6   :  { %1675 = vst.msk [vmem:[#allocation2 + $0x8] sm:$0xff] %vm1673_vm0, %v1670_v52 }
 0x1d7   :  { %2205 = shalt.err (!%p2202_p4)
}
 0x1d8   :  { %s2206_s17 = scalar_lea.hbm %s2837_s5, 256 }
 0x1d9   :  { %p2207_p5 = scmp.ne.s32.totalorder %s2837_s5, %s2206_s17  ;;  %p2210_p6 = scmp.lt.u32.totalorder %s2206_s17, %s2837_s5 }
 0x1db   :  { %p2212_p7 = pnand %p2210_p6, %p2207_p5 }
 0x1dd   :  { %2215 = shalt.err (!%p2212_p7)
}
 0x1de   :  { %s2220_s20 = smov 128   ;;  %s2221_s21 = smov 8  }
 0x1df   :  { %1687 = dma.vmem_to_hbm [thread:$0]  %s1682_s4, 256, %s2837_s5, [#allocation3], %s2220_s20, %s2220_s20, %s2221_s21  }
 0x1e0   :  { %2216 = dma.done.wait [#allocation3], 256  }
 0x1e1   :  { %2217 = vsyncadd [#allocation3], 4294967040 }
 0x1e2   :  { %1691 = vsyncpa [#allocation3], 1 }

</bundles_post_ra>
